<compile_context>
chip_gen: v5e
topology: v5e:2x2
jax: 0.10.0
libtpu: 0.0.40
codegen_flags: <defaults>
</compile_context>

<pallas_src>
import functools

import jax
import jax.numpy as jnp
from jax.experimental import pallas as pl
from jax.experimental.pallas import tpu as pltpu


def _round_up(x, m):
    return ((x + m - 1) // m) * m


def _scatter_sum_kernel(ec_ref, ef_ref, out_ref, *, num_edges):
    # ec_ref : (TE, 1)  int32    edge -> destination node index
    # ef_ref : (3, TE)  float32  per-edge forces, xyz on sublanes, edges on lanes
    # out_ref: (3, TN)  float32  per-node forces for this node tile
    #                            (resident across the edge grid axis)
    n_step = pl.program_id(0)
    e_step = pl.program_id(1)

    @pl.when(e_step == 0)
    def _():
        out_ref[...] = jnp.zeros_like(out_ref)

    te = ec_ref.shape[0]
    tn = out_ref.shape[1]

    ef = ef_ref[...]                                               # (3, TE)
    if num_edges % te != 0:
        # Partial last edge tile: its tail columns hold unspecified HBM/VMEM
        # contents.  Zero the force columns (a couple of vregs of VPU work);
        # a zeroed column contributes nothing regardless of what its garbage
        # edge_center value matches, and this is NaN-safe.
        e_ids = jax.lax.broadcasted_iota(jnp.int32, (3, te), 1) + e_step * te
        ef = jnp.where(e_ids < num_edges, ef, 0.0)

    # One-hot scatter matrix: edges on sublanes, nodes on lanes.  The node-tile
    # offset is folded into the small (TE, 1) column so the big (TE, TN) compare
    # runs against a plain, loop-invariant lane iota.
    ec_local = ec_ref[...] - n_step * tn                           # (TE, 1)
    node_ids = jax.lax.broadcasted_iota(jnp.int32, (te, tn), 1)    # (TE, TN)
    onehot = (node_ids == ec_local).astype(jnp.float32)            # (TE, TN)

    # (3, TE) @ (TE, TN) -> lane-dense (3, TN) accumulation, f32 throughout.
    out_ref[...] += jnp.dot(ef, onehot, preferred_element_type=jnp.float32)


def edgewise_forces_sum(edge_f, edge_center, num_nodes, *,
                        edge_tile=512, node_tile=512):
    """Scatter-sum per-edge forces into per-node forces (Pallas TPU).

    edge_f:      (num_edges, 3) float  per-edge force vectors
    edge_center: (num_edges,)   int    destination node index of each edge
    num_nodes:   int                   number of atoms (== len(species))
    returns:     (num_nodes, 3) edge_f.dtype
    """
    assert edge_tile % 128 == 0 and node_tile % 128 == 0
    num_edges = int(edge_f.shape[0])
    num_nodes = int(num_nodes)
    out_dtype = edge_f.dtype

    if num_edges == 0:
        return jnp.zeros((num_nodes, 3), out_dtype)

    # Lane-dense layouts at the boundary: xyz on sublanes / edges on lanes, and
    # the edge->node index as a column.  (Tiny ops; callers that already hold
    # edge_f as (3, E) can feed the kernel directly.)
    ef_t = edge_f.astype(jnp.float32).T                            # (3, E)
    ec_col = edge_center.astype(jnp.int32).reshape(num_edges, 1)   # (E, 1)

    # Edge tiling: whole array as one (full-dim) tile if it fits, otherwise
    # edge_tile-wide tiles with in-kernel masking of the partial last tile.
    te = num_edges if num_edges <= edge_tile else edge_tile
    n_edge_tiles = pl.cdiv(num_edges, te)

    # Node tiling: pad the lane-dense output to a multiple of the node tile.
    # Padded columns only ever receive contributions from out-of-range
    # edge_center values and are sliced off (matching segment_sum semantics).
    tn = min(node_tile, _round_up(num_nodes, 128))
    n_pad = _round_up(num_nodes, tn)
    n_node_tiles = n_pad // tn

    kernel = functools.partial(_scatter_sum_kernel, num_edges=num_edges)

    out_t = pl.pallas_call(
        kernel,
        out_shape=jax.ShapeDtypeStruct((3, n_pad), jnp.float32),
        grid_spec=pltpu.PrefetchScalarGridSpec(
            num_scalar_prefetch=0,
            grid=(n_node_tiles, n_edge_tiles),
            in_specs=[
                pl.BlockSpec((te, 1), lambda n, e: (e, 0)),
                pl.BlockSpec((3, te), lambda n, e: (0, e)),
            ],
            out_specs=pl.BlockSpec((3, tn), lambda n, e: (0, n)),
        ),
        compiler_params=pltpu.CompilerParams(
            dimension_semantics=("parallel", "arbitrary")),
    )(ec_col, ef_t)

    return out_t[:, :num_nodes].T.astype(out_dtype)                # (num_nodes, 3)


if __name__ == "__main__":
    key = jax.random.PRNGKey(0)
    k1, k2, k3, k4, k5, k6 = jax.random.split(key, 6)

    # Small case, matching the module's toy sizes: 8 atoms, 16 edges.
    num_nodes, num_edges = 8, 16
    edge_center = jax.random.randint(k1, (num_edges,), 0, num_nodes, dtype=jnp.int32)
    edge_f = jax.random.normal(k2, (num_edges, 3), dtype=jnp.float32)

    atom_f = jax.block_until_ready(
        edgewise_forces_sum(edge_f, edge_center, num_nodes))
    ref = jax.ops.segment_sum(edge_f, edge_center, num_segments=num_nodes)
    assert atom_f.shape == (num_nodes, 3)
    assert jnp.allclose(atom_f, ref, atol=1e-5, rtol=1e-5)

    # Tile-misaligned case: multiple node tiles, multiple edge tiles, and a
    # partial last edge tile handled by the in-kernel mask (no host-side pad).
    num_nodes2, num_edges2 = 200, 1000
    edge_center2 = jax.random.randint(k3, (num_edges2,), 0, num_nodes2,
                                      dtype=jnp.int32)
    edge_f2 = jax.random.normal(k4, (num_edges2, 3), dtype=jnp.float32)
    atom_f2 = jax.block_until_ready(
        edgewise_forces_sum(edge_f2, edge_center2, num_nodes2,
                            edge_tile=256, node_tile=128))
    ref2 = jax.ops.segment_sum(edge_f2, edge_center2, num_segments=num_nodes2)
    assert atom_f2.shape == (num_nodes2, 3)
    assert jnp.allclose(atom_f2, ref2, atol=1e-3, rtol=1e-3)

    # Exact-multiple case: exercises the mask-free fast path (num_edges % TE == 0).
    num_nodes3, num_edges3 = 128, 512
    edge_center3 = jax.random.randint(k5, (num_edges3,), 0, num_nodes3,
                                      dtype=jnp.int32)
    edge_f3 = jax.random.normal(k6, (num_edges3, 3), dtype=jnp.float32)
    atom_f3 = jax.block_until_ready(
        edgewise_forces_sum(edge_f3, edge_center3, num_nodes3))
    ref3 = jax.ops.segment_sum(edge_f3, edge_center3, num_segments=num_nodes3)
    assert atom_f3.shape == (num_nodes3, 3)
    assert jnp.allclose(atom_f3, ref3, atol=1e-3, rtol=1e-3)

    print("KERNEL_OK")
</pallas_src>

<mosaic_0001>
module attributes {stable_mosaic.version = 11 : i64} {
  func.func @_scatter_sum_kernel(%arg0: i32, %arg1: i32, %arg2: memref<16x1xi32, #tpu.memory_space<vmem>>, %arg3: memref<3x16xf32, #tpu.memory_space<vmem>>, %arg4: memref<3x128xf32, #tpu.memory_space<vmem>>) attributes {dimension_semantics = [#tpu.dimension_semantics<parallel>, #tpu.dimension_semantics<arbitrary>], iteration_bounds = array<i64: 1, 1>, scalar_prefetch = 0 : i64, scratch_operands = 0 : i64, tpu.core_type = #tpu.core_type<tc>, window_params = [{transform_indices = @transform_0, window_bounds = array<i64: 16, 1>}, {transform_indices = @transform_1, window_bounds = array<i64: 3, 16>}, {transform_indices = @transform_2, window_bounds = array<i64: 3, 128>}]} {
    %c0_i32 = arith.constant 0 : i32
    %0 = arith.cmpi eq, %arg1, %c0_i32 : i32
    %1 = arith.extui %0 : i1 to i32
    %c0_i32_0 = arith.constant 0 : i32
    %2 = arith.cmpi ne, %1, %c0_i32_0 : i32
    scf.if %2 {
      %cst_8 = arith.constant 0.000000e+00 : f32
      %17 = vector.broadcast %cst_8 : f32 to vector<3x128xf32>
      %c0_9 = arith.constant 0 : index
      %c0_10 = arith.constant 0 : index
      %18 = vector.load %arg4[%c0_9, %c0_10] : memref<3x128xf32, #tpu.memory_space<vmem>>, vector<3x128xf32>
      tpu.vector_store %arg4[%c0_9, %c0_10], %17 {strides = array<i32>} : memref<3x128xf32, #tpu.memory_space<vmem>>, vector<3x128xf32>,
    } else {
    }
    %c0 = arith.constant 0 : index
    %c0_1 = arith.constant 0 : index
    %3 = vector.load %arg3[%c0, %c0_1] : memref<3x16xf32, #tpu.memory_space<vmem>>, vector<3x16xf32>
    %c0_2 = arith.constant 0 : index
    %c0_3 = arith.constant 0 : index
    %4 = vector.load %arg2[%c0_2, %c0_3] : memref<16x1xi32, #tpu.memory_space<vmem>>, vector<16x1xi32>
    %c128_i32 = arith.constant 128 : i32
    %5 = arith.muli %arg0, %c128_i32 : i32
    %6 = vector.broadcast %5 : i32 to vector<16x1xi32>
    %7 = arith.subi %4, %6 : vector<16x1xi32>
    %8 = tpu.iota {dimensions = array<i32: 1>} : vector<16x128xi32>
    %9 = vector.broadcast %7 : vector<16x1xi32> to vector<16x128xi32>
    %10 = arith.cmpi eq, %8, %9 : vector<16x128xi32>
    %11 = arith.extui %10 : vector<16x128xi1> to vector<16x128xi32>
    %12 = arith.sitofp %11 : vector<16x128xi32> to vector<16x128xf32>
    %c0_4 = arith.constant 0 : index
    %c0_5 = arith.constant 0 : index
    %13 = vector.load %arg4[%c0_4, %c0_5] : memref<3x128xf32, #tpu.memory_space<vmem>>, vector<3x128xf32>
    %cst = arith.constant dense<0.000000e+00> : vector<3x128xf32>
    %14 = tpu.matmul %3, %12, %cst {dimension_numbers = #tpu.dot_dimension_numbers<[1], [0], [0], [1], [0, 0, 1, 1], [], []>} : vector<3x16xf32>, vector<16x128xf32>, vector<3x128xf32> -> vector<3x128xf32>
    %15 = arith.addf %13, %14 : vector<3x128xf32>
    %c0_6 = arith.constant 0 : index
    %c0_7 = arith.constant 0 : index
    %16 = vector.load %arg4[%c0_6, %c0_7] : memref<3x128xf32, #tpu.memory_space<vmem>>, vector<3x128xf32>
    tpu.vector_store %arg4[%c0_6, %c0_7], %15 {strides = array<i32>} : memref<3x128xf32, #tpu.memory_space<vmem>>, vector<3x128xf32>,
    return
  }
  func.func @transform_0(%arg0: i32, %arg1: i32) -> (i32, i32) {
    %c0_i32 = arith.constant 0 : i32
    %c0_i32_0 = arith.constant 0 : i32
    return %arg1, %c0_i32 : i32, i32
  }
  func.func @transform_1(%arg0: i32, %arg1: i32) -> (i32, i32) {
    %c0_i32 = arith.constant 0 : i32
    %c0_i32_0 = arith.constant 0 : i32
    return %c0_i32, %arg1 : i32, i32
  }
  func.func @transform_2(%arg0: i32, %arg1: i32) -> (i32, i32) {
    %c0_i32 = arith.constant 0 : i32
    %c0_i32_0 = arith.constant 0 : i32
    return %c0_i32, %arg0 : i32, i32
  }
}

</mosaic_0001>

<bundles_post_ra>
// kernel: tpu_custom_call.1
= control target key start
LH: loop header
LB: loop body
LE: loop exit
PB: predicated region body
PF: predicated region fallthrough
CT: control target
= control target key end

     0   :  { %s148_s0 = inlined_call_operand.vmem [shape: s32[16,1], index: 0, kind: input, shape index: {}]   ;;  %s149_s1 = inlined_call_operand.vmem [shape: f32[3,16], index: 1, kind: input, shape index: {}]   ;;  %s150_s2 = inlined_call_operand.hbm [shape: f32[3,128], index: 2, kind: output, shape index: {}]  }
   0x1   :  { %v19_v0 = vld [vmem:[%s148_s0 + $0x8] sm:$0xff] }
   0x2   :  { %7 = vsyncpa [#allocation3], 0  ;;  %v117_v1 = vmov 0   ;;  %v18_v2 = vld [vmem:[%s148_s0] sm:$0xff]  ;;  %v118_v3 = vmov 0.0   ;;  %v24_v4 = vlaneseq  ;;  %v119_v7 = vmov 1.0  }
   0x3   :  { %90 = vset.pattern.permute.xlu0 %v117_v1  ;;  %16 = vst [vmem:[#allocation2] sm:$0x7] %v118_v3  ;;  %v17_v9 = vld [vmem:[%s149_s1] sm:$0x7]  ;;  %vm39_vm1 = vcmask 130048   ;;  %s120_s0 = smov [#allocation2]  }
   0x4   :  { %30 = vperm.xlu0 %90, %v19_v0   ;;  %v25_v5 = vand.u32 127, %v24_v4  ;;  %s70_s15 = sshll.u32 %s120_s0, 4  ;;  %s72_s18 = sshll.u32 %s150_s2, 4  ;;  %s71_s15 = int_to_ptr.vmem [resolvable:$true] %s70_s15  ;;  %s73_s18 = int_to_ptr.hbm [resolvable:$true] %s72_s18 }
   0xa   :  { %v38_v10 = vld [vmem:[#allocation2] sm:$0x7] }
   0xc   :  { %27 = vperm.xlu0 %90, %v18_v2  }
  0x76   :  { %v31_v6 = vpop.permute.xlu0 %30 }
  0x77   :  { %vm33_vm0 = vcmp.eq.s32.totalorder %v25_v5, %v31_v6 }
  0x78   :  { %83 = vmatpush.msk.msra.mxu0 %vm33_vm0, %v119_v7 }
  0x7e   :  { %v28_v8 = vpop.permute.xlu0 %27 }
  0x7f   :  { %vm32_vm2 = vcmp.eq.s32.totalorder %v25_v5, %v28_v8 }
  0x80   :  { %84 = vmatpush.msk.msra.mxu0 %vm32_vm2, %v119_v7 }
  0x81   :  { %85 = vmatmul.msk.f32.vlgmr.msra.gmra.mxu0 %vm39_vm1, %v17_v9 }
  0xfe   :  { %v60_v11 = vpop.f32.mrf.mxu0 }
  0xff   :  { %v63_v12 = vadd.f32 %v60_v11, %v38_v10 }
 0x101   :  { %64 = vst [vmem:[#allocation2] sm:$0x7] %v63_v12 }
 0x102   :  { %75 = dma.vmem_to_hbm [thread:$0]  %s71_s15, 64, %s73_s18, [#allocation3]  }
 0x103   :  { %115 = dma.done.wait [#allocation3], 64  }
 0x104   :  { %116 = vsyncadd [#allocation3], 4294967232 }
 0x105   :  { %80 = vsyncpa [#allocation3], 1 }

</bundles_post_ra>
